<compile_context>
chip_gen: v7x
topology: tpu7x:2x2x1
jax: 0.10.0
libtpu: 0.0.40
codegen_flags: <defaults>
</compile_context>

<pallas_src>
import jax
import jax.numpy as jnp
from jax.experimental import pallas as pl
from jax.experimental.pallas import tpu as pltpu


def _leaky_relu(v, slope=0.2):
    return jnp.where(v > 0, v, slope * v)


def _round_up(n, m):
    return ((n + m - 1) // m) * m


def icnn_kernel(xt_ref, w_all_ref, b_all_ref, wc1_ref, wc2_ref, wclast_ref,
                out_ref):
    H = wc1_ref.shape[0]
    xt = xt_ref[...].astype(jnp.float32)                  # (d, tile_m)

    # All four x-path projections + biases in a single MXU push:
    # (M_pad, d) @ (d, tile_m), bias broadcast along lanes.
    xp = jnp.dot(w_all_ref[...], xt, preferred_element_type=jnp.float32)
    xp = xp + b_all_ref[...]

    # layer 0: y = leaky_relu(W0 x + b0) ** 2
    y = _leaky_relu(xp[0:H, :]) ** 2                      # (H, tile_m)

    # middle (input-convex) layers: y = leaky_relu(Wl x + bl + Wc y)
    y = _leaky_relu(xp[H:2 * H, :] +
                    jnp.dot(wc1_ref[...], y, preferred_element_type=jnp.float32))
    y = _leaky_relu(xp[2 * H:3 * H, :] +
                    jnp.dot(wc2_ref[...], y, preferred_element_type=jnp.float32))

    # final layer: scalar per row.  The (1,H)@(H,tile_m) convex part is done as
    # a VPU multiply + sublane reduction instead of an M=1 MXU push.
    z = xp[3 * H:3 * H + 1, :] + jnp.sum(wclast_ref[...] * y,
                                         axis=0, keepdims=True)
    out_ref[...] = _leaky_relu(z).astype(out_ref.dtype)   # lane-dense (1, tile_m)


def icnn_forward(x, params, *, tile_m=1024):
    """x: (B, d) float32.  params: dict from init_icnn_params.  Returns (B, 1)."""
    B, d = x.shape
    H = params["w0"].shape[1]

    # ---- fused / transposed parameter layout (built once, tiny) ----
    M = 3 * H + 1
    M_pad = _round_up(M, 8)
    w_all = jnp.zeros((M_pad, d), jnp.float32)
    w_all = w_all.at[0:H].set(params["w0"].T)
    w_all = w_all.at[H:2 * H].set(params["wl1"].T)
    w_all = w_all.at[2 * H:3 * H].set(params["wl2"].T)
    w_all = w_all.at[3 * H:3 * H + 1].set(params["wlast"].T)
    b_all = jnp.zeros((M_pad, 1), jnp.float32)
    b_all = b_all.at[0:H].set(params["b0"].T)
    b_all = b_all.at[H:2 * H].set(params["bl1"].T)
    b_all = b_all.at[2 * H:3 * H].set(params["bl2"].T)
    b_all = b_all.at[3 * H:3 * H + 1].set(params["blast"].T)
    wc1_t = params["wc1"].T            # (H, H)
    wc2_t = params["wc2"].T            # (H, H)
    wclast = params["wclast"]          # (H, 1)

    # ---- batch tiling: large lane-aligned tiles, zero-pad arbitrary B ----
    tile_m = _round_up(tile_m, 128)
    tm = min(tile_m, _round_up(B, 128))   # whole (padded) batch if it is small
    B_pad = _round_up(B, tm)
    xt = jnp.zeros((d, B_pad), jnp.float32).at[:, :B].set(x.T)  # batch on lanes

    weight_args = (w_all, b_all, wc1_t, wc2_t, wclast)

    def full_spec(a):
        nd = a.ndim
        return pl.BlockSpec(a.shape, lambda i, _nd=nd: (0,) * _nd)

    out = pl.pallas_call(
        icnn_kernel,
        out_shape=jax.ShapeDtypeStruct((1, B_pad), jnp.float32),
        grid_spec=pltpu.PrefetchScalarGridSpec(
            num_scalar_prefetch=0,
            grid=(B_pad // tm,),
            in_specs=[pl.BlockSpec((d, tm), lambda i: (0, i))]
                     + [full_spec(a) for a in weight_args],
            out_specs=pl.BlockSpec((1, tm), lambda i: (0, i)),
        ),
        compiler_params=pltpu.CompilerParams(
            dimension_semantics=("parallel",)),
    )(xt, *weight_args)

    return out[0, :B].reshape(B, 1)


def init_icnn_params(key, d=2, hidden_size=64):
    """Deterministic init matching PyTorch nn.Linear default (U(-1/sqrt(in), 1/sqrt(in))),
    with convex-layer weights clamped to >= 0 (positive=True)."""
    ks = jax.random.split(key, 16)
    ki = iter(range(16))

    def lin_w(k, fan_in, fan_out):  # returns (fan_in, fan_out) == W.T
        bound = 1.0 / jnp.sqrt(fan_in)
        return jax.random.uniform(k, (fan_in, fan_out), jnp.float32, -bound, bound)

    def lin_b(k, fan_in, fan_out):  # returns (1, fan_out) for broadcasting
        bound = 1.0 / jnp.sqrt(fan_in)
        return jax.random.uniform(k, (1, fan_out), jnp.float32, -bound, bound)

    p = {}
    p["w0"] = lin_w(ks[next(ki)], d, hidden_size)
    p["b0"] = lin_b(ks[next(ki)], d, hidden_size)
    p["wl1"] = lin_w(ks[next(ki)], d, hidden_size)
    p["bl1"] = lin_b(ks[next(ki)], d, hidden_size)
    p["wc1"] = jnp.clip(lin_w(ks[next(ki)], hidden_size, hidden_size), 0.0, None)
    p["wl2"] = lin_w(ks[next(ki)], d, hidden_size)
    p["bl2"] = lin_b(ks[next(ki)], d, hidden_size)
    p["wc2"] = jnp.clip(lin_w(ks[next(ki)], hidden_size, hidden_size), 0.0, None)
    p["wlast"] = lin_w(ks[next(ki)], d, 1)
    p["blast"] = lin_b(ks[next(ki)], d, 1)
    p["wclast"] = jnp.clip(lin_w(ks[next(ki)], hidden_size, 1), 0.0, None)
    return p


def icnn_reference(x, p):
    """Pure-JAX reference replicating the PyTorch forward exactly."""
    def lrelu(v):
        return jnp.where(v > 0, v, 0.2 * v)
    y = lrelu(x @ p["w0"] + p["b0"]) ** 2
    y = lrelu(x @ p["wl1"] + p["bl1"] + y @ p["wc1"])
    y = lrelu(x @ p["wl2"] + p["bl2"] + y @ p["wc2"])
    y = x @ p["wlast"] + p["blast"] + y @ p["wclast"]
    return lrelu(y)


if __name__ == "__main__":
    key = jax.random.PRNGKey(0)
    k_param, k_x = jax.random.split(key)

    d, hidden = 2, 64
    batch = 200  # deliberately not a multiple of 128: exercises the padding path

    params = init_icnn_params(k_param, d=d, hidden_size=hidden)
    x = jax.random.normal(k_x, (batch, d), dtype=jnp.float32)

    out = icnn_forward(x, params)
    out = jax.block_until_ready(out)

    ref = icnn_reference(x, params)
    assert out.shape == (batch, 1)
    assert jnp.allclose(out, ref, atol=1e-5, rtol=1e-5), "mismatch vs reference"

    print("KERNEL_OK")
</pallas_src>

<mosaic_0001>
module attributes {stable_mosaic.version = 11 : i64} {
  func.func @icnn_kernel(%arg0: i32, %arg1: memref<2x256xf32, #tpu.memory_space<vmem>>, %arg2: memref<200x2xf32, #tpu.memory_space<vmem>>, %arg3: memref<200x1xf32, #tpu.memory_space<vmem>>, %arg4: memref<64x64xf32, #tpu.memory_space<vmem>>, %arg5: memref<64x64xf32, #tpu.memory_space<vmem>>, %arg6: memref<64x1xf32, #tpu.memory_space<vmem>>, %arg7: memref<1x256xf32, #tpu.memory_space<vmem>>) attributes {dimension_semantics = [#tpu.dimension_semantics<parallel>], iteration_bounds = array<i64: 1>, scalar_prefetch = 0 : i64, scratch_operands = 0 : i64, tpu.core_type = #tpu.core_type<tc>, window_params = [{transform_indices = @transform_0, window_bounds = array<i64: 2, 256>}, {pipeline_mode = #tpu.pipeline_mode<synchronous>, transform_indices = @transform_1, window_bounds = array<i64: 200, 2>}, {pipeline_mode = #tpu.pipeline_mode<synchronous>, transform_indices = @transform_2, window_bounds = array<i64: 200, 1>}, {pipeline_mode = #tpu.pipeline_mode<synchronous>, transform_indices = @transform_3, window_bounds = array<i64: 64, 64>}, {pipeline_mode = #tpu.pipeline_mode<synchronous>, transform_indices = @transform_4, window_bounds = array<i64: 64, 64>}, {pipeline_mode = #tpu.pipeline_mode<synchronous>, transform_indices = @transform_5, window_bounds = array<i64: 64, 1>}, {transform_indices = @transform_6, window_bounds = array<i64: 1, 256>}]} {
    %c0 = arith.constant 0 : index
    %c0_0 = arith.constant 0 : index
    %0 = vector.load %arg1[%c0, %c0_0] : memref<2x256xf32, #tpu.memory_space<vmem>>, vector<2x256xf32>
    %c0_1 = arith.constant 0 : index
    %c0_2 = arith.constant 0 : index
    %1 = vector.load %arg2[%c0_1, %c0_2] : memref<200x2xf32, #tpu.memory_space<vmem>>, vector<200x2xf32>
    %cst = arith.constant dense<0.000000e+00> : vector<200x256xf32>
    %2 = tpu.matmul %1, %0, %cst {dimension_numbers = #tpu.dot_dimension_numbers<[1], [0], [0], [1], [0, 0, 1, 1], [], []>} : vector<200x2xf32>, vector<2x256xf32>, vector<200x256xf32> -> vector<200x256xf32>
    %c0_3 = arith.constant 0 : index
    %c0_4 = arith.constant 0 : index
    %3 = vector.load %arg3[%c0_3, %c0_4] : memref<200x1xf32, #tpu.memory_space<vmem>>, vector<200x1xf32>
    %4 = vector.broadcast %3 : vector<200x1xf32> to vector<200x256xf32>
    %5 = arith.addf %2, %4 : vector<200x256xf32>
    %6 = vector.extract_strided_slice %5 {offsets = [0, 0], sizes = [64, 256], strides = [1, 1]} : vector<200x256xf32> to vector<64x256xf32>
    %cst_5 = arith.constant 0.000000e+00 : f32
    %7 = vector.broadcast %cst_5 : f32 to vector<64x256xf32>
    %8 = arith.cmpf ogt, %6, %7 : vector<64x256xf32>
    %cst_6 = arith.constant 2.000000e-01 : f32
    %9 = vector.broadcast %cst_6 : f32 to vector<64x256xf32>
    %10 = arith.mulf %9, %6 : vector<64x256xf32>
    %11 = arith.select %8, %6, %10 : vector<64x256xi1>, vector<64x256xf32>
    %12 = arith.mulf %11, %11 : vector<64x256xf32>
    %13 = vector.extract_strided_slice %5 {offsets = [64, 0], sizes = [64, 256], strides = [1, 1]} : vector<200x256xf32> to vector<64x256xf32>
    %c0_7 = arith.constant 0 : index
    %c0_8 = arith.constant 0 : index
    %14 = vector.load %arg4[%c0_7, %c0_8] : memref<64x64xf32, #tpu.memory_space<vmem>>, vector<64x64xf32>
    %cst_9 = arith.constant dense<0.000000e+00> : vector<64x256xf32>
    %15 = tpu.matmul %14, %12, %cst_9 {dimension_numbers = #tpu.dot_dimension_numbers<[1], [0], [0], [1], [0, 0, 1, 1], [], []>} : vector<64x64xf32>, vector<64x256xf32>, vector<64x256xf32> -> vector<64x256xf32>
    %16 = arith.addf %13, %15 : vector<64x256xf32>
    %cst_10 = arith.constant 0.000000e+00 : f32
    %17 = vector.broadcast %cst_10 : f32 to vector<64x256xf32>
    %18 = arith.cmpf ogt, %16, %17 : vector<64x256xf32>
    %cst_11 = arith.constant 2.000000e-01 : f32
    %19 = vector.broadcast %cst_11 : f32 to vector<64x256xf32>
    %20 = arith.mulf %19, %16 : vector<64x256xf32>
    %21 = arith.select %18, %16, %20 : vector<64x256xi1>, vector<64x256xf32>
    %22 = vector.extract_strided_slice %5 {offsets = [128, 0], sizes = [64, 256], strides = [1, 1]} : vector<200x256xf32> to vector<64x256xf32>
    %c0_12 = arith.constant 0 : index
    %c0_13 = arith.constant 0 : index
    %23 = vector.load %arg5[%c0_12, %c0_13] : memref<64x64xf32, #tpu.memory_space<vmem>>, vector<64x64xf32>
    %cst_14 = arith.constant dense<0.000000e+00> : vector<64x256xf32>
    %24 = tpu.matmul %23, %21, %cst_14 {dimension_numbers = #tpu.dot_dimension_numbers<[1], [0], [0], [1], [0, 0, 1, 1], [], []>} : vector<64x64xf32>, vector<64x256xf32>, vector<64x256xf32> -> vector<64x256xf32>
    %25 = arith.addf %22, %24 : vector<64x256xf32>
    %cst_15 = arith.constant 0.000000e+00 : f32
    %26 = vector.broadcast %cst_15 : f32 to vector<64x256xf32>
    %27 = arith.cmpf ogt, %25, %26 : vector<64x256xf32>
    %cst_16 = arith.constant 2.000000e-01 : f32
    %28 = vector.broadcast %cst_16 : f32 to vector<64x256xf32>
    %29 = arith.mulf %28, %25 : vector<64x256xf32>
    %30 = arith.select %27, %25, %29 : vector<64x256xi1>, vector<64x256xf32>
    %31 = vector.extract_strided_slice %5 {offsets = [192, 0], sizes = [1, 256], strides = [1, 1]} : vector<200x256xf32> to vector<1x256xf32>
    %c0_17 = arith.constant 0 : index
    %c0_18 = arith.constant 0 : index
    %32 = vector.load %arg6[%c0_17, %c0_18] : memref<64x1xf32, #tpu.memory_space<vmem>>, vector<64x1xf32>
    %33 = vector.broadcast %32 : vector<64x1xf32> to vector<64x256xf32>
    %34 = arith.mulf %33, %30 : vector<64x256xf32>
    %cst_19 = arith.constant dense<0.000000e+00> : vector<256xf32>
    %35 = vector.multi_reduction <add>, %34, %cst_19 [0] : vector<64x256xf32> to vector<256xf32>
    %36 = vector.shape_cast %35 : vector<256xf32> to vector<1x256xf32>
    %37 = arith.addf %31, %36 : vector<1x256xf32>
    %cst_20 = arith.constant 0.000000e+00 : f32
    %38 = vector.broadcast %cst_20 : f32 to vector<1x256xf32>
    %39 = arith.cmpf ogt, %37, %38 : vector<1x256xf32>
    %cst_21 = arith.constant 2.000000e-01 : f32
    %40 = vector.broadcast %cst_21 : f32 to vector<1x256xf32>
    %41 = arith.mulf %40, %37 : vector<1x256xf32>
    %42 = arith.select %39, %37, %41 : vector<1x256xi1>, vector<1x256xf32>
    %c0_22 = arith.constant 0 : index
    %c0_23 = arith.constant 0 : index
    %43 = vector.load %arg7[%c0_22, %c0_23] : memref<1x256xf32, #tpu.memory_space<vmem>>, vector<1x256xf32>
    tpu.vector_store %arg7[%c0_22, %c0_23], %42 {strides = array<i32>} : memref<1x256xf32, #tpu.memory_space<vmem>>, vector<1x256xf32>,
    return
  }
  func.func @transform_0(%arg0: i32) -> (i32, i32) {
    %c0_i32 = arith.constant 0 : i32
    %c0_i32_0 = arith.constant 0 : i32
    return %c0_i32, %arg0 : i32, i32
  }
  func.func @transform_1(%arg0: i32) -> (i32, i32) {
    %c0_i32 = arith.constant 0 : i32
    %c0_i32_0 = arith.constant 0 : i32
    %c0_i32_1 = arith.constant 0 : i32
    return %c0_i32, %c0_i32_0 : i32, i32
  }
  func.func @transform_2(%arg0: i32) -> (i32, i32) {
    %c0_i32 = arith.constant 0 : i32
    %c0_i32_0 = arith.constant 0 : i32
    %c0_i32_1 = arith.constant 0 : i32
    return %c0_i32, %c0_i32_0 : i32, i32
  }
  func.func @transform_3(%arg0: i32) -> (i32, i32) {
    %c0_i32 = arith.constant 0 : i32
    %c0_i32_0 = arith.constant 0 : i32
    %c0_i32_1 = arith.constant 0 : i32
    return %c0_i32, %c0_i32_0 : i32, i32
  }
  func.func @transform_4(%arg0: i32) -> (i32, i32) {
    %c0_i32 = arith.constant 0 : i32
    %c0_i32_0 = arith.constant 0 : i32
    %c0_i32_1 = arith.constant 0 : i32
    return %c0_i32, %c0_i32_0 : i32, i32
  }
  func.func @transform_5(%arg0: i32) -> (i32, i32) {
    %c0_i32 = arith.constant 0 : i32
    %c0_i32_0 = arith.constant 0 : i32
    %c0_i32_1 = arith.constant 0 : i32
    return %c0_i32, %c0_i32_0 : i32, i32
  }
  func.func @transform_6(%arg0: i32) -> (i32, i32) {
    %c0_i32 = arith.constant 0 : i32
    %c0_i32_0 = arith.constant 0 : i32
    return %c0_i32, %arg0 : i32, i32
  }
}

</mosaic_0001>

<bundles_post_ra>
// kernel: tpu_custom_call.1
= control target key start
LH: loop header
LB: loop body
LE: loop exit
PB: predicated region body
PF: predicated region fallthrough
CT: control target
= control target key end

     0   :  { %vm285_vm0 = vcmask 1041408   ;;  %v1295_v2 = vmov 0.0   ;;  %vm209_vm1 = vcmask 15360   ;;  %v1296_v5 = vmov 0   ;;  %s1776_s0 = inlined_call_operand.vmem [shape: f32[2,256], index: 0, kind: input, shape index: {}]   ;;  %s1777_s1 = inlined_call_operand.vmem [shape: f32[200,2], index: 1, kind: input, shape index: {}]   ;;  %s1778_s2 = inlined_call_operand.vmem [shape: f32[200,1], index: 2, kind: input, shape index: {}]   ;;  %s1779_s3 = inlined_call_operand.vmem [shape: f32[64,64], index: 3, kind: input, shape index: {}]   ;;  %s1780_s4 = inlined_call_operand.vmem [shape: f32[64,64], index: 4, kind: input, shape index: {}]   ;;  %s1781_s5 = inlined_call_operand.vmem [shape: f32[64,1], index: 5, kind: input, shape index: {}]   ;;  %s1782_s6 = inlined_call_operand.hbm [shape: f32[1,256], index: 6, kind: output, shape index: {}]  }
   0x1   :  { %v1123_v0 = vld.sshfl [vmem:[%s1776_s0] sm:$0x33 pattern:$0x76325410]  ;;  %354 = vmatprep.mubr.f32.mxu0 %v1295_v2  ;;  %378 = vmatprep.mubr.f32.mxu1 %v1295_v2  ;;  %v26_v7 = vld [vmem:[%s1777_s1 + $0x8] sm:$0xff]  ;;  %v52_v9 = vld [vmem:[%s1778_s2 + $0x10] sm:$0xff] }
   0x2   :  { %v208_v1 = vcombine.high %v1123_v0, %v1123_v0  ;;  %v25_v3 = vld [vmem:[%s1777_s1] sm:$0xff]  ;;  %1269 = vset.pattern.permute.xlu0 %v1296_v5  ;;  %1270 = vset.pattern.permute.xlu1 %v1296_v5  ;;  %v30_v8 = vld [vmem:[%s1777_s1 + $0x28] sm:$0xff]  ;;  %v53_v11 = vld [vmem:[%s1778_s2 + $0x18] sm:$0xff] }
   0x3   :  { %v29_v4 = vld [vmem:[%s1777_s1 + $0x20] sm:$0xff]  ;;  %87 = vperm.xlu1 %1270, %v52_v9   ;;  %v51_v10 = vld [vmem:[%s1778_s2 + $0x8] sm:$0xff]  ;;  %v27_v12 = vld [vmem:[%s1777_s1 + $0x10] sm:$0xff] }
   0x4   :  { %1124 = vmatprep.subr.msk.mxu0 %vm285_vm0, %v208_v1  ;;  %1199 = vmatprep.subr.msk.mxu1 %vm285_vm0, %v208_v1  ;;  %v50_v6 = vld [vmem:[%s1778_s2] sm:$0xff]  ;;  %v31_v13 = vld [vmem:[%s1777_s1 + $0x30] sm:$0xff]  ;;  %v55_v15 = vld [vmem:[%s1778_s2 + $0x28] sm:$0xff] }
   0x5   :  { %1125 = vmatpush1.msk.msra.mxu0 %vm285_vm0, %v1123_v0  ;;  %1200 = vmatpush1.msk.msra.mxu1 %vm285_vm0, %v1123_v0  ;;  %v54_v14 = vld [vmem:[%s1778_s2 + $0x20] sm:$0xff]  ;;  %v28_v16 = vld [vmem:[%s1777_s1 + $0x18] sm:$0xff]  ;;  %v56_v18 = vld [vmem:[%s1778_s2 + $0x30] sm:$0xff] }
   0x6   :  { %1126 = vmatmul.mubr.msk.f32.vlgmr.msra.gmra.mrb[0].mxu0 %vm209_vm1, %v25_v3  ;;  %1130 = vmatmul.mubr.msk.f32.vlgmr.msra.gmra.mrb[0].mxu1 %vm209_vm1, %v29_v4  ;;  %v32_v17 = vld [vmem:[%s1777_s1 + $0x38] sm:$0xff]  ;;  %v33_v20 = vld [vmem:[%s1777_s1 + $0x40] sm:$0xff]  ;;  %v59_v22 = vld [vmem:[%s1778_s2 + $0x48] sm:$0xff] }
   0x7   :  { %360 = vmatprep.mubr.f32.mxu0 %v1295_v2  ;;  %384 = vmatprep.mubr.f32.mxu1 %v1295_v2  ;;  %v57_v19 = vld [vmem:[%s1778_s2 + $0x38] sm:$0xff]  ;;  %v58_v21 = vld [vmem:[%s1778_s2 + $0x40] sm:$0xff] }
   0x8   :  { %77 = vperm.xlu0 %1269, %v50_v6   ;;  %92 = vperm.xlu1 %1270, %v53_v11  }
   0xa   :  { %1127 = vmatmul.mubr.msk.f32.gmra.mrb[2].mxu0 %vm209_vm1, %v26_v7  ;;  %1131 = vmatmul.mubr.msk.f32.gmra.mrb[2].mxu1 %vm209_vm1, %v30_v8 }
   0xb   :  { %366 = vmatprep.mubr.f32.mxu0 %v1295_v2  ;;  %390 = vmatprep.mubr.f32.mxu1 %v1295_v2 }
   0xc   :  { %82 = vperm.xlu0 %1269, %v51_v10   ;;  %102 = vperm.xlu1 %1270, %v55_v15  }
   0xe   :  { %1128 = vmatmul.mubr.msk.f32.gmra.mrb[4].mxu0 %vm209_vm1, %v27_v12  ;;  %1132 = vmatmul.mubr.msk.f32.gmra.mrb[4].mxu1 %vm209_vm1, %v31_v13 }
   0xf   :  { %372 = vmatprep.mubr.f32.mxu0 %v1295_v2  ;;  %396 = vmatprep.mubr.f32.mxu1 %v1295_v2 }
  0x10   :  { %97 = vperm.xlu0 %1269, %v54_v14   ;;  %112 = vperm.xlu1 %1270, %v57_v19  }
  0x12   :  { %1129 = vmatmul.mubr.msk.f32.gmra.mrb[6].mxu0 %vm209_vm1, %v28_v16  ;;  %1133 = vmatmul.mubr.msk.f32.gmra.mrb[6].mxu1 %vm209_vm1, %v32_v17 }
  0x13   :  { %402 = vmatprep.mubr.f32.mxu1 %v1295_v2  ;;  %666 = vmatprep.mubr.f32.mxu0 %v1295_v2 }
  0x14   :  { %107 = vperm.xlu0 %1269, %v56_v18  }
  0x15   :  { %11 = vsyncpa [#allocation3], 0  ;;  %v34_v23 = vld [vmem:[%s1777_s1 + $0x48] sm:$0xff]  ;;  %122 = vperm.xlu1 %1270, %v59_v22   ;;  %v60_v24 = vld [vmem:[%s1778_s2 + $0x50] sm:$0xff] }
  0x16   :  { %1134 = vmatmul.mubr.msk.f32.gmra.mrb[8].mxu1 %vm209_vm1, %v33_v20  ;;  %v61_v25 = vld [vmem:[%s1778_s2 + $0x58] sm:$0xff]  ;;  %v35_v26 = vld [vmem:[%s1777_s1 + $0x50] sm:$0xff]  ;;  %v62_v27 = vld [vmem:[%s1778_s2 + $0x60] sm:$0xff] }
  0x17   :  { %408 = vmatprep.mubr.f32.mxu1 %v1295_v2  ;;  %v63_v28 = vld [vmem:[%s1778_s2 + $0x68] sm:$0xff]  ;;  %v36_v29 = vld [vmem:[%s1777_s1 + $0x58] sm:$0xff]  ;;  %v64_v30 = vld [vmem:[%s1778_s2 + $0x70] sm:$0xff] }
  0x18   :  { %117 = vperm.xlu0 %1269, %v58_v21   ;;  %v65_v31 = vld [vmem:[%s1778_s2 + $0x78] sm:$0xff]  ;;  %v37_v32 = vld [vmem:[%s1777_s1 + $0x60] sm:$0xff]  ;;  %v67_v34 = vld [vmem:[%s1778_s2 + $0x88] sm:$0xff] }
  0x19   :  { %132 = vperm.xlu1 %1270, %v61_v25   ;;  %v66_v33 = vld [vmem:[%s1778_s2 + $0x80] sm:$0xff]  ;;  %v38_v35 = vld [vmem:[%s1777_s1 + $0x68] sm:$0xff]  ;;  %v68_v36 = vld [vmem:[%s1778_s2 + $0x90] sm:$0xff] }
  0x1a   :  { %1135 = vmatmul.mubr.msk.f32.gmra.mrb[10].mxu1 %vm209_vm1, %v34_v23  ;;  %v69_v37 = vld [vmem:[%s1778_s2 + $0x98] sm:$0xff]  ;;  %v39_v38 = vld [vmem:[%s1777_s1 + $0x70] sm:$0xff]  ;;  %v70_v39 = vld [vmem:[%s1778_s2 + $0xa0] sm:$0xff] }
  0x1b   :  { %414 = vmatprep.mubr.f32.mxu1 %v1295_v2  ;;  %v988_v40 = vld [vmem:[%s1781_s5] sm:$0xff]  ;;  %v40_v41 = vld [vmem:[%s1777_s1 + $0x78] sm:$0xff]  ;;  %v989_v42 = vld [vmem:[%s1781_s5 + $0x8] sm:$0xff] }
  0x1c   :  { %127 = vperm.xlu0 %1269, %v60_v24   ;;  %v71_v43 = vld [vmem:[%s1778_s2 + $0xa8] sm:$0xff]  ;;  %v41_v44 = vld [vmem:[%s1777_s1 + $0x80] sm:$0xff]  ;;  %v990_v45 = vld [vmem:[%s1781_s5 + $0x10] sm:$0xff] }
  0x1d   :  { %142 = vperm.xlu1 %1270, %v63_v28   ;;  %v72_v46 = vld [vmem:[%s1778_s2 + $0xb0] sm:$0xff]  ;;  %v42_v47 = vld [vmem:[%s1777_s1 + $0x88] sm:$0xff]  ;;  %v991_v48 = vld [vmem:[%s1781_s5 + $0x18] sm:$0xff] }
  0x1e   :  { %1136 = vmatmul.mubr.msk.f32.gmra.mrb[12].mxu1 %vm209_vm1, %v35_v26  ;;  %v73_v49 = vld [vmem:[%s1778_s2 + $0xb8] sm:$0xff]  ;;  %v43_v50 = vld [vmem:[%s1777_s1 + $0x90] sm:$0xff]  ;;  %v992_v51 = vld [vmem:[%s1781_s5 + $0x20] sm:$0xff] }
  0x1f   :  { %420 = vmatprep.mubr.f32.mxu1 %v1295_v2  ;;  %v993_v52 = vld [vmem:[%s1781_s5 + $0x28] sm:$0xff]  ;;  %v44_v53 = vld [vmem:[%s1777_s1 + $0x98] sm:$0xff]  ;;  %v994_v54 = vld [vmem:[%s1781_s5 + $0x30] sm:$0xff] }
  0x20   :  { %137 = vperm.xlu0 %1269, %v62_v27   ;;  %v995_v55 = vld [vmem:[%s1781_s5 + $0x38] sm:$0xff]  ;;  %v45_v56 = vld [vmem:[%s1777_s1 + $0xa0] sm:$0xff]  ;;  %v46_v58 = vld [vmem:[%s1777_s1 + $0xa8] sm:$0xff] }
  0x21   :  { %152 = vperm.xlu1 %1270, %v65_v31   ;;  %v74_v57 = vld [vmem:[%s1778_s2 + $0xc0] sm:$0xff]  ;;  %v47_v59 = vld [vmem:[%s1777_s1 + $0xb0] sm:$0xff]  ;;  %v48_v60 = vld [vmem:[%s1777_s1 + $0xb8] sm:$0xff] }
  0x22   :  { %1137 = vmatmul.mubr.msk.f32.gmra.mrb[14].mxu1 %vm209_vm1, %v36_v29  ;;  %v49_v61 = vld [vmem:[%s1777_s1 + $0xc0] sm:$0xff] }
  0x23   :  { %426 = vmatprep.mubr.f32.mxu1 %v1295_v2 }
  0x24   :  { %147 = vperm.xlu0 %1269, %v64_v30  }
  0x25   :  { %162 = vperm.xlu1 %1270, %v67_v34  }
  0x26   :  { %1138 = vmatmul.mubr.msk.f32.gmra.mrb[16].mxu1 %vm209_vm1, %v37_v32 }
  0x27   :  { %432 = vmatprep.mubr.f32.mxu1 %v1295_v2 }
  0x28   :  { %157 = vperm.xlu0 %1269, %v66_v33  }
  0x29   :  { %172 = vperm.xlu1 %1270, %v69_v37  }
  0x2a   :  { %1139 = vmatmul.mubr.msk.f32.gmra.mrb[18].mxu1 %vm209_vm1, %v38_v35 }
  0x2b   :  { %438 = vmatprep.mubr.f32.mxu1 %v1295_v2 }
  0x2c   :  { %167 = vperm.xlu0 %1269, %v68_v36  }
  0x2d   :  { %998 = vperm.xlu1 %1270, %v988_v40  }
  0x2e   :  { %1140 = vmatmul.mubr.msk.f32.gmra.mrb[20].mxu1 %vm209_vm1, %v39_v38 }
  0x2f   :  { %444 = vmatprep.mubr.f32.mxu1 %v1295_v2 }
  0x30   :  { %177 = vperm.xlu0 %1269, %v70_v39  }
  0x31   :  { %182 = vperm.xlu1 %1270, %v71_v43  }
  0x32   :  { %1141 = vmatmul.mubr.msk.f32.gmra.mrb[22].mxu1 %vm209_vm1, %v40_v41 }
  0x33   :  { %450 = vmatprep.mubr.f32.mxu1 %v1295_v2 }
  0x34   :  { %1003 = vperm.xlu0 %1269, %v989_v42  }
  0x35   :  { %187 = vperm.xlu1 %1270, %v72_v46  }
  0x36   :  { %1142 = vmatmul.mubr.msk.f32.gmra.mrb[24].mxu1 %vm209_vm1, %v41_v44 }
  0x37   :  { %456 = vmatprep.mubr.f32.mxu1 %v1295_v2 }
  0x38   :  { %1008 = vperm.xlu0 %1269, %v990_v45  }
  0x39   :  { %192 = vperm.xlu1 %1270, %v73_v49  }
  0x3a   :  { %1143 = vmatmul.mubr.msk.f32.gmra.mrb[26].mxu1 %vm209_vm1, %v42_v47 }
  0x3b   :  { %462 = vmatprep.mubr.f32.mxu1 %v1295_v2 }
  0x3c   :  { %1013 = vperm.xlu0 %1269, %v991_v48  }
  0x3d   :  { %1023 = vperm.xlu1 %1270, %v993_v52  }
  0x3e   :  { %1144 = vmatmul.mubr.msk.f32.gmra.mrb[28].mxu1 %vm209_vm1, %v43_v50 }
  0x3f   :  { %468 = vmatprep.mubr.f32.mxu1 %v1295_v2 }
  0x40   :  { %1018 = vperm.xlu0 %1269, %v992_v51  }
  0x41   :  { %1033 = vperm.xlu1 %1270, %v995_v55  }
  0x42   :  { %1145 = vmatmul.mubr.msk.f32.gmra.mrb[30].mxu1 %vm209_vm1, %v44_v53 }
  0x43   :  { %474 = vmatprep.mubr.f32.mxu1 %v1295_v2 }
  0x44   :  { %1028 = vperm.xlu0 %1269, %v994_v54  }
  0x46   :  { %1146 = vmatmul.mubr.msk.f32.gmra.mrb[32].mxu1 %vm209_vm1, %v45_v56 }
  0x47   :  { %480 = vmatprep.mubr.f32.mxu1 %v1295_v2 }
  0x48   :  { %197 = vperm.xlu0 %1269, %v74_v57  }
  0x4a   :  { %1147 = vmatmul.mubr.msk.f32.gmra.mrb[34].mxu1 %vm209_vm1, %v46_v58 }
  0x4b   :  { %486 = vmatprep.mubr.f32.mxu1 %v1295_v2 }
  0x4e   :  { %1148 = vmatmul.mubr.msk.f32.gmra.mrb[36].mxu1 %vm209_vm1, %v47_v59 }
  0x4f   :  { %492 = vmatprep.mubr.f32.mxu1 %v1295_v2 }
  0x52   :  { %1149 = vmatmul.mubr.msk.f32.gmra.mrb[38].mxu1 %vm209_vm1, %v48_v60 }
  0x53   :  { %498 = vmatprep.mubr.f32.mxu1 %v1295_v2 }
  0x56   :  { %1150 = vmatmul.mubr.msk.f32.gmra.mrb[40].mxu1 %vm209_vm1, %v49_v61 }
  0x82   :  { %v1562_v63 = vpop.permute.xlu1 %87 }
  0x87   :  { %v78_v62 = vpop.permute.xlu0 %77  ;;  %v1564_v1 = vpop.permute.xlu1 %92 }
  0x8b   :  { %v83_v0 = vpop.permute.xlu0 %82  ;;  %v103_v14 = vpop.permute.xlu1 %102 }
  0x8f   :  { %v98_v3 = vpop.permute.xlu0 %97  ;;  %v113_v57 = vpop.permute.xlu1 %112 }
  0x93   :  { %v108_v34 = vpop.permute.xlu0 %107 }
  0xd9   :  { %v356_v4 = vpop.f32.mrb[0].mxu0  ;;  %v380_v5 = vpop.f32.mrb[0].mxu1 }
  0xda   :  { %v357_v6 = vadd.f32 %v356_v4, %v78_v62  ;;  %v358_v7 = vpop.f32.mrb[1].mxu0  ;;  %v381_v8 = vadd.f32 %v380_v5, %v98_v3  ;;  %v382_v9 = vpop.f32.mrb[1].mxu1 }
  0xdb   :  { %v359_v10 = vadd.f32 %v358_v7, %v78_v62  ;;  %v383_v11 = vadd.f32 %v382_v9, %v98_v3 }
  0xdc   :  { %vm505_vm2 = vcmp.gt.f32.partialorder %v357_v6, 0.0  ;;  %v521_v12 = vmul.f32 0.2, %v357_v6  ;;  %vm513_vm3 = vcmp.gt.f32.partialorder %v381_v8, 0.0  ;;  %v529_v13 = vmul.f32 0.2, %v381_v8 }
  0xdd   :  { %v522_v15 = vmul.f32 0.2, %v359_v10  ;;  %vm506_vm4 = vcmp.gt.f32.partialorder %v359_v10, 0.0  ;;  %v362_v18 = vpop.f32.mrb[2].mxu0  ;;  %v386_v19 = vpop.f32.mrb[2].mxu1  ;;  %vm514_vm5 = vcmp.gt.f32.partialorder %v383_v11, 0.0 }
  0xde   :  { %v537_v16 = vsel %vm505_vm2, %v357_v6, %v521_v12  ;;  %v545_v17 = vsel %vm513_vm3, %v381_v8, %v529_v13  ;;  %v364_v20 = vpop.f32.mrb[3].mxu0  ;;  %v388_v21 = vpop.f32.mrb[3].mxu1  ;;  %v530_v23 = vmul.f32 0.2, %v383_v11  ;;  %v363_v24 = vadd.f32 %v362_v18, %v83_v0 }
  0xdf   :  { %v1566_v22 = vmul.f32 %v537_v16, %v537_v16  ;;  %v387_v25 = vadd.f32 %v386_v19, %v103_v14  ;;  %v538_v26 = vsel %vm506_vm4, %v359_v10, %v522_v15  ;;  %v1568_v27 = vmul.f32 %v545_v17, %v545_v17 }
  0xe0   :  { %v365_v28 = vadd.f32 %v364_v20, %v83_v0  ;;  %v389_v29 = vadd.f32 %v388_v21, %v103_v14  ;;  %vm507_vm6 = vcmp.gt.f32.partialorder %v363_v24, 0.0  ;;  %v523_v32 = vmul.f32 0.2, %v363_v24 }
  0xe1   :  { %v368_v30 = vpop.f32.mrb[4].mxu0  ;;  %v392_v31 = vpop.f32.mrb[4].mxu1  ;;  %vm515_vm7 = vcmp.gt.f32.partialorder %v387_v25, 0.0  ;;  %v531_v33 = vmul.f32 0.2, %v387_v25  ;;  %v546_v43 = vsel %vm514_vm5, %v383_v11, %v530_v23  ;;  %v554_v49 = vmul.f32 %v538_v26, %v538_v26 }
  0xe2   :  { %vm508_vm8 = vcmp.gt.f32.partialorder %v365_v28, 0.0  ;;  %v524_v35 = vmul.f32 0.2, %v365_v28  ;;  %vm516_vm9 = vcmp.gt.f32.partialorder %v389_v29, 0.0  ;;  %v532_v36 = vmul.f32 0.2, %v389_v29 }
  0xe3   :  { %v539_v37 = vsel %vm507_vm6, %v363_v24, %v523_v32  ;;  %v547_v38 = vsel %vm515_vm7, %v387_v25, %v531_v33  ;;  %v369_v39 = vadd.f32 %v368_v30, %v1562_v63  ;;  %v393_v40 = vadd.f32 %v392_v31, %v108_v34  ;;  %v370_v41 = vpop.f32.mrb[5].mxu0  ;;  %v394_v42 = vpop.f32.mrb[5].mxu1 }
  0xe4   :  { %v1572_v44 = vmul.f32 %v539_v37, %v539_v37  ;;  %v1574_v45 = vmul.f32 %v547_v38, %v547_v38  ;;  %v540_v46 = vsel %vm508_vm8, %v365_v28, %v524_v35  ;;  %v548_v50 = vsel %vm516_vm9, %v389_v29, %v532_v36 }
  0xe5   :  { %v374_v47 = vpop.f32.mrb[6].mxu0  ;;  %v398_v48 = vpop.f32.mrb[6].mxu1  ;;  %vm509_vm10 = vcmp.gt.f32.partialorder %v369_v39, 0.0  ;;  %v525_v51 = vmul.f32 0.2, %v369_v39  ;;  %vm517_vm11 = vcmp.gt.f32.partialorder %v393_v40, 0.0  ;;  %v556_v58 = vmul.f32 %v540_v46, %v540_v46 }
  0xe6   :  { %v376_v52 = vpop.f32.mrb[7].mxu0  ;;  %v400_v53 = vpop.f32.mrb[7].mxu1  ;;  %v1169_v54 = vpack.c.bf16 %v1572_v44, %v1566_v22  ;;  %v1177_v55 = vpack.c.bf16 %v1574_v45, %v1568_v27  ;;  %v533_v56 = vmul.f32 0.2, %v393_v40  ;;  %v371_v59 = vadd.f32 %v370_v41, %v1562_v63  ;;  %v569_v44 = vld [vmem:[%s1779_s3] sm:$0xff] }
  0xe7   :  { %v395_v60 = vadd.f32 %v394_v42, %v108_v34  ;;  %v375_v61 = vadd.f32 %v374_v47, %v1564_v1  ;;  %v564_v62 = vmul.f32 %v548_v50, %v548_v50  ;;  %v541_v0 = vsel %vm509_vm10, %v369_v39, %v525_v51  ;;  %v570_v47 = vld [vmem:[%s1779_s3 + $0x8] sm:$0xff]  ;;  %v571_v50 = vld [vmem:[%s1779_s3 + $0x10] sm:$0xff] }
  0xe8   :  { %v399_v3 = vadd.f32 %v398_v48, %v113_v57  ;;  %v377_v4 = vadd.f32 %v376_v52, %v1564_v1  ;;  %v549_v6 = vsel %vm517_vm11, %v393_v40, %v533_v56  ;;  %vm510_vm12 = vcmp.gt.f32.partialorder %v371_v59, 0.0  ;;  %v573_v56 = vld [vmem:[%s1779_s3 + $0x20] sm:$0xff] }
  0xe9   :  { %v1583_v5 = vpop.f32.mrb[8].mxu1  ;;  %v526_v7 = vmul.f32 0.2, %v371_v59  ;;  %vm518_vm13 = vcmp.gt.f32.partialorder %v395_v60, 0.0  ;;  %v534_v9 = vmul.f32 0.2, %v395_v60  ;;  %v557_v63 = vmul.f32 %v541_v0, %v541_v0 }
  0xea   :  { %v1585_v8 = vpop.f32.mrb[9].mxu1  ;;  %vm511_vm14 = vcmp.gt.f32.partialorder %v375_v61, 0.0  ;;  %v527_v10 = vmul.f32 0.2, %v375_v61  ;;  %vm519_vm15 = vcmp.gt.f32.partialorder %v399_v3, 0.0  ;;  %vm512_vm0 = vcmp.gt.f32.partialorder %v377_v4, 0.0 }
  0xeb   :  { %v535_v11 = vmul.f32 0.2, %v399_v3  ;;  %v528_v12 = vmul.f32 0.2, %v377_v4  ;;  %v565_v13 = vmul.f32 %v549_v6, %v549_v6  ;;  %v542_v14 = vsel %vm510_vm12, %v371_v59, %v526_v7  ;;  %v574_v59 = vld [vmem:[%s1779_s3 + $0x28] sm:$0xff] }
  0xec   :  { %v543_v15 = vsel %vm511_vm14, %v375_v61, %v527_v10  ;;  %v401_v1 = vadd.f32 %v400_v53, %v113_v57  ;;  %v550_v17 = vsel %vm518_vm13, %v395_v60, %v534_v9  ;;  %v562_v25 = vmul.f32 %v546_v43, %v546_v43  ;;  %v572_v53 = vld [vmem:[%s1779_s3 + $0x18] sm:$0xff] }
  0xed   :  { %v1587_v16 = vpop.f32.mrb[10].mxu1  ;;  %v559_v18 = vmul.f32 %v543_v15, %v543_v15  ;;  %v551_v19 = vsel %vm519_vm15, %v399_v3, %v535_v11  ;;  %v544_v20 = vsel %vm512_vm0, %v377_v4, %v528_v12  ;;  %v558_v26 = vmul.f32 %v542_v14, %v542_v14  ;;  %v576_v4 = vld [vmem:[%s1779_s3 + $0x38] sm:$0xff]  ;;  %v118_v14 = vpop.permute.xlu0 %117 }
  0xee   :  { %v1589_v21 = vpop.f32.mrb[11].mxu1  ;;  %v567_v22 = vmul.f32 %v551_v19, %v551_v19  ;;  %v560_v23 = vmul.f32 %v544_v20, %v544_v20  ;;  %vm520_vm1 = vcmp.gt.f32.partialorder %v401_v1, 0.0  ;;  %v536_v24 = vmul.f32 0.2, %v401_v1  ;;  %v123_v20 = vpop.permute.xlu1 %122 }
  0xef   :  { %v1173_v27 = vpack.c.bf16 %v559_v18, %v557_v63  ;;  %v1167_v28 = vpack.c.bf16 %v556_v58, %v554_v49  ;;  %v566_v32 = vmul.f32 %v550_v17, %v550_v17  ;;  %v1175_v36 = vpack.c.bf16 %v564_v62, %v562_v25  ;;  %v575_v62 = vld [vmem:[%s1779_s3 + $0x30] sm:$0xff] }
  0xf0   :  { %v1181_v29 = vpack.c.bf16 %v567_v22, %v565_v13  ;;  %v552_v30 = vsel %vm520_vm1, %v401_v1, %v536_v24  ;;  %v1171_v34 = vpack.c.bf16 %v560_v23, %v558_v26  ;;  %vm577_vm2 = vcmask 523264  }
  0xf1   :  { %v1591_v31 = vpop.f32.mrb[12].mxu1  ;;  %v568_v33 = vmul.f32 %v552_v30, %v552_v30  ;;  %1168 = vmatprep.subr.bf16.mxu0 %v1167_v28  ;;  %v405_v15 = vadd.f32 %v1583_v5, %v118_v14  ;;  %v407_v1 = vadd.f32 %v1585_v8, %v118_v14  ;;  %v411_v23 = vadd.f32 %v1587_v16, %v123_v20 }
  0xf2   :  { %v1593_v35 = vpop.f32.mrb[13].mxu1  ;;  %1170 = vmatpush1.bf16.msra.mxu0 %v1169_v54  ;;  %v413_v24 = vadd.f32 %v1589_v21, %v123_v20 }
  0xf3   :  { %1172 = vmatprep.subr.bf16.mxu0 %v1171_v34  ;;  %v1179_v37 = vpack.c.bf16 %v568_v33, %v566_v32 }
  0xf5   :  { %v1595_v38 = vpop.f32.mrb[14].mxu1 }
  0xf6   :  { %v1597_v39 = vpop.f32.mrb[15].mxu1  ;;  %1174 = vmatpush1.bf16.msra.mxu0 %v1173_v27 }
  0xf7   :  { %1176 = vmatprep.subr.bf16.mxu0 %v1175_v36 }
  0xf9   :  { %v1599_v40 = vpop.f32.mrb[16].mxu1 }
  0xfa   :  { %v1601_v41 = vpop.f32.mrb[17].mxu1  ;;  %1178 = vmatpush1.bf16.msra.mxu0 %v1177_v55 }
  0xfb   :  { %1180 = vmatprep.subr.bf16.mxu0 %v1179_v37 }
  0xfd   :  { %v1603_v42 = vpop.f32.mrb[18].mxu1 }
  0xfe   :  { %v1605_v43 = vpop.f32.mrb[19].mxu1  ;;  %1182 = vmatpush1.bf16.msra.mxu0 %v1181_v29  ;;  %v128_v29 = vpop.permute.xlu0 %127 }
  0xff   :  { %v417_v5 = vadd.f32 %v1591_v31, %v128_v29  ;;  %v419_v33 = vadd.f32 %v1593_v35, %v128_v29 }
 0x101   :  { %v1610_v45 = vpop.f32.mrb[20].mxu1  ;;  %1151 = vmatmul.mubr.msk.f32.vlgmr.msra.gmra.mrb[8].mxu0 %vm577_vm2, %v569_v44 }
 0x102   :  { %v1613_v46 = vpop.f32.mrb[21].mxu1  ;;  %672 = vmatprep.mubr.f32.mxu0 %v1295_v2 }
 0x105   :  { %v1619_v48 = vpop.f32.mrb[22].mxu1  ;;  %1152 = vmatmul.mubr.msk.f32.gmra.mrb[10].mxu0 %vm577_vm2, %v570_v47  ;;  %v133_v47 = vpop.permute.xlu1 %132 }
 0x106   :  { %v1622_v49 = vpop.f32.mrb[23].mxu1  ;;  %678 = vmatprep.mubr.f32.mxu0 %v1295_v2 }
 0x109   :  { %v1628_v51 = vpop.f32.mrb[24].mxu1  ;;  %1153 = vmatmul.mubr.msk.f32.gmra.mrb[12].mxu0 %vm577_vm2, %v571_v50 }
 0x10a   :  { %v1631_v52 = vpop.f32.mrb[25].mxu1  ;;  %684 = vmatprep.mubr.f32.mxu0 %v1295_v2 }
 0x10d   :  { %v1637_v54 = vpop.f32.mrb[26].mxu1  ;;  %1154 = vmatmul.mubr.msk.f32.gmra.mrb[14].mxu0 %vm577_vm2, %v572_v53 }
 0x10e   :  { %v1640_v55 = vpop.f32.mrb[27].mxu1  ;;  %690 = vmatprep.mubr.f32.mxu0 %v1295_v2 }
 0x111   :  { %v1646_v57 = vpop.f32.mrb[28].mxu1  ;;  %1155 = vmatmul.mubr.msk.f32.gmra.mrb[16].mxu0 %vm577_vm2, %v573_v56 }
 0x112   :  { %v1649_v58 = vpop.f32.mrb[29].mxu1  ;;  %696 = vmatprep.mubr.f32.mxu0 %v1295_v2 }
 0x115   :  { %v1655_v60 = vpop.f32.mrb[30].mxu1  ;;  %1156 = vmatmul.mubr.msk.f32.gmra.mrb[18].mxu0 %vm577_vm2, %v574_v59 }
 0x116   :  { %v1658_v61 = vpop.f32.mrb[31].mxu1  ;;  %702 = vmatprep.mubr.f32.mxu0 %v1295_v2 }
 0x119   :  { %v1664_v0 = vpop.f32.mrb[32].mxu1  ;;  %1157 = vmatmul.mubr.msk.f32.gmra.mrb[20].mxu0 %vm577_vm2, %v575_v62  ;;  %v423_v62 = vadd.f32 %v1595_v38, %v133_v47 }
 0x11a   :  { %v1667_v3 = vpop.f32.mrb[33].mxu1  ;;  %708 = vmatprep.mubr.f32.mxu0 %v1295_v2 }
 0x11d   :  { %v1673_v6 = vpop.f32.mrb[34].mxu1  ;;  %1158 = vmatmul.mubr.msk.f32.gmra.mrb[22].mxu0 %vm577_vm2, %v576_v4  ;;  %v425_v4 = vadd.f32 %v1597_v39, %v133_v47 }
 0x11e   :  { %v1676_v7 = vpop.f32.mrb[35].mxu1  ;;  %875 = vmatprep.mubr.f32.mxu0 %v1295_v2 }
 0x121   :  { %v1679_v9 = vpop.f32.mrb[36].mxu1 }
 0x122   :  { %v1681_v10 = vpop.f32.mrb[37].mxu1 }
 0x125   :  { %v1683_v63 = vpop.f32.mrb[38].mxu1 }
 0x126   :  { %v1685_v11 = vpop.f32.mrb[39].mxu1 }
 0x129   :  { %v1687_v12 = vpop.f32.mrb[40].mxu1 }
 0x12a   :  { %v1689_v13 = vpop.f32.mrb[41].mxu1 }
 0x1d4   :  { %v668_v17 = vpop.f32.mrb[8].mxu0 }
 0x1d5   :  { %v715_v18 = vadd.f32 %v668_v17, %v405_v15  ;;  %v670_v19 = vpop.f32.mrb[9].mxu0  ;;  %v138_v17 = vpop.permute.xlu0 %137 }
 0x1d6   :  { %v716_v22 = vadd.f32 %v670_v19, %v407_v1  ;;  %v429_v20 = vadd.f32 %v1599_v40, %v138_v17  ;;  %v431_v38 = vadd.f32 %v1601_v41, %v138_v17 }
 0x1d7   :  { %v747_v26 = vmul.f32 0.2, %v715_v18  ;;  %vm731_vm3 = vcmp.gt.f32.partialorder %v715_v18, 0.0 }
 0x1d8   :  { %v674_v25 = vpop.f32.mrb[10].mxu0  ;;  %v748_v30 = vmul.f32 0.2, %v716_v22  ;;  %vm732_vm4 = vcmp.gt.f32.partialorder %v716_v22, 0.0 }
 0x1d9   :  { %v717_v27 = vadd.f32 %v674_v25, %v411_v23  ;;  %v676_v28 = vpop.f32.mrb[11].mxu0  ;;  %v763_v36 = vsel %vm731_vm3, %v715_v18, %v747_v26 }
 0x1da   :  { %v718_v32 = vadd.f32 %v676_v28, %v413_v24  ;;  %v764_v56 = vsel %vm732_vm4, %v716_v22, %v748_v30  ;;  %v143_v28 = vpop.permute.xlu1 %142 }
 0x1db   :  { %vm733_vm5 = vcmp.gt.f32.partialorder %v717_v27, 0.0  ;;  %v749_v8 = vmul.f32 0.2, %v717_v27 }
 0x1dc   :  { %vm734_vm6 = vcmp.gt.f32.partialorder %v718_v32, 0.0  ;;  %v750_v34 = vmul.f32 0.2, %v718_v32  ;;  %v680_v16 = vpop.f32.mrb[12].mxu0 }
 0x1dd   :  { %v765_v21 = vsel %vm733_vm5, %v717_v27, %v749_v8  ;;  %v719_v37 = vadd.f32 %v680_v16, %v417_v5  ;;  %v682_v44 = vpop.f32.mrb[13].mxu0  ;;  %v435_v8 = vadd.f32 %v1603_v42, %v143_v28 }
 0x1de   :  { %v1185_v50 = vpack.c.bf16 %v765_v21, %v763_v36  ;;  %v720_v53 = vadd.f32 %v682_v44, %v419_v33  ;;  %v766_v59 = vsel %vm734_vm6, %v718_v32, %v750_v34  ;;  %v437_v33 = vadd.f32 %v1605_v43, %v143_v28  ;;  %v148_v21 = vpop.permute.xlu0 %147 }
 0x1df   :  { %v1183_v31 = vpack.c.bf16 %v766_v59, %v764_v56  ;;  %v751_v15 = vmul.f32 0.2, %v719_v37  ;;  %vm735_vm7 = vcmp.gt.f32.partialorder %v719_v37, 0.0  ;;  %v441_v47 = vadd.f32 %v1610_v45, %v148_v21 }
 0x1e0   :  { %v686_v14 = vpop.f32.mrb[14].mxu0  ;;  %v752_v18 = vmul.f32 0.2, %v720_v53  ;;  %vm736_vm8 = vcmp.gt.f32.partialorder %v720_v53, 0.0  ;;  %v443_v42 = vadd.f32 %v1613_v46, %v148_v21 }
 0x1e1   :  { %v721_v35 = vadd.f32 %v686_v14, %v423_v62  ;;  %v688_v1 = vpop.f32.mrb[15].mxu0  ;;  %1184 = vmatprep.subr.bf16.mxu0 %v1183_v31  ;;  %v767_v24 = vsel %vm735_vm7, %v719_v37, %v751_v15 }
 0x1e2   :  { %v722_v19 = vadd.f32 %v688_v1, %v425_v4  ;;  %1186 = vmatpush1.bf16.msra.mxu0 %v1185_v50  ;;  %v768_v32 = vsel %vm736_vm8, %v720_v53, %v752_v18  ;;  %v153_v4 = vpop.permute.xlu1 %152 }
 0x1e3   :  { %vm737_vm9 = vcmp.gt.f32.partialorder %v721_v35, 0.0  ;;  %v753_v22 = vmul.f32 0.2, %v721_v35  ;;  %v447_v17 = vadd.f32 %v1619_v48, %v153_v4  ;;  %v449_v18 = vadd.f32 %v1622_v49, %v153_v4 }
 0x1e4   :  { %vm738_vm10 = vcmp.gt.f32.partialorder %v722_v19, 0.0  ;;  %v754_v23 = vmul.f32 0.2, %v722_v19  ;;  %v692_v39 = vpop.f32.mrb[16].mxu0 }
 0x1e5   :  { %v769_v25 = vsel %vm737_vm9, %v721_v35, %v753_v22  ;;  %v723_v26 = vadd.f32 %v692_v39, %v429_v20  ;;  %v694_v27 = vpop.f32.mrb[17].mxu0 }
 0x1e6   :  { %v1189_v29 = vpack.c.bf16 %v769_v25, %v767_v24  ;;  %v724_v30 = vadd.f32 %v694_v27, %v431_v38  ;;  %v770_v5 = vsel %vm738_vm10, %v722_v19, %v754_v23 }
 0x1e7   :  { %v1187_v40 = vpack.c.bf16 %v770_v5, %v768_v32  ;;  %v755_v16 = vmul.f32 0.2, %v723_v26  ;;  %vm739_vm11 = vcmp.gt.f32.partialorder %v723_v26, 0.0  ;;  %v781_v32 = vld [vmem:[%s1780_s4 + $0x10] sm:$0xff]  ;;  %v782_v5 = vld [vmem:[%s1780_s4 + $0x18] sm:$0xff] }
 0x1e8   :  { %v698_v34 = vpop.f32.mrb[18].mxu0  ;;  %v756_v37 = vmul.f32 0.2, %v724_v30  ;;  %vm740_vm12 = vcmp.gt.f32.partialorder %v724_v30, 0.0 }
 0x1e9   :  { %v725_v41 = vadd.f32 %v698_v34, %v435_v8  ;;  %v700_v36 = vpop.f32.mrb[19].mxu0  ;;  %1188 = vmatprep.subr.bf16.mxu0 %v1187_v40  ;;  %v771_v56 = vsel %vm739_vm11, %v723_v26, %v755_v16  ;;  %v783_v8 = vld [vmem:[%s1780_s4 + $0x20] sm:$0xff]  ;;  %v784_v40 = vld [vmem:[%s1780_s4 + $0x28] sm:$0xff]  ;;  %v786_v34 = vld [vmem:[%s1780_s4 + $0x38] sm:$0xff]  ;;  %v158_v16 = vpop.permute.xlu0 %157 }
 0x1ea   :  { %v726_v44 = vadd.f32 %v700_v36, %v437_v33  ;;  %1190 = vmatpush1.bf16.msra.mxu0 %v1189_v29  ;;  %v772_v35 = vsel %vm740_vm12, %v724_v30, %v756_v37  ;;  %v779_v29 = vld [vmem:[%s1780_s4] sm:$0xff]  ;;  %v780_v30 = vld [vmem:[%s1780_s4 + $0x8] sm:$0xff]  ;;  %v785_v33 = vld [vmem:[%s1780_s4 + $0x30] sm:$0xff]  ;;  %s1298_s4 = smov [#allocation2]  }
 0x1eb   :  { %vm741_vm13 = vcmp.gt.f32.partialorder %v725_v41, 0.0  ;;  %v757_v50 = vmul.f32 0.2, %v725_v41  ;;  %s1115_s14 = sshll.u32 %s1298_s4, 4  ;;  %s1116_s14 = int_to_ptr.vmem [resolvable:$true] %s1115_s14 }
 0x1ec   :  { %vm742_vm14 = vcmp.gt.f32.partialorder %v726_v44, 0.0  ;;  %v758_v53 = vmul.f32 0.2, %v726_v44  ;;  %v704_v43 = vpop.f32.mrb[20].mxu0  ;;  %s1271_s15 = scalar_lea.vmem %s1116_s14, 32  ;;  %p1276_p1 = scmp.lt.s32.totalorder %s1116_s14, %s1116_s14 }
 0x1ed   :  { %v773_v59 = vsel %vm741_vm13, %v725_v41, %v757_v50  ;;  %v727_v62 = vadd.f32 %v704_v43, %v441_v47  ;;  %v706_v31 = vpop.f32.mrb[21].mxu0  ;;  %v163_v41 = vpop.permute.xlu1 %162  ;;  %v455_v47 = vadd.f32 %v1631_v52, %v158_v16  ;;  %p1272_p0 = scmp.ne.s32.totalorder %s1116_s14, %s1271_s15  ;;  %p1277_p2 = scmp.lt.s32.totalorder %s1271_s15, %s1271_s15 }
 0x1ee   :  { %v1193_v14 = vpack.c.bf16 %v773_v59, %v771_v56  ;;  %v728_v15 = vadd.f32 %v706_v31, %v443_v42  ;;  %v774_v1 = vsel %vm742_vm14, %v726_v44, %v758_v53  ;;  %v168_v36 = vpop.permute.xlu0 %167  ;;  %v453_v44 = vadd.f32 %v1628_v51, %v158_v16 }
 0x1ef   :  { %v1191_v45 = vpack.c.bf16 %v774_v1, %v772_v35  ;;  %v759_v20 = vmul.f32 0.2, %v727_v62  ;;  %vm743_vm15 = vcmp.gt.f32.partialorder %v727_v62, 0.0  ;;  %v459_v59 = vadd.f32 %v1637_v54, %v163_v41  ;;  %p1278_p3 = por %p1277_p2, %p1276_p1 }
 0x1f0   :  { %v710_v19 = vpop.f32.mrb[22].mxu0  ;;  %v760_v38 = vmul.f32 0.2, %v728_v15  ;;  %vm744_vm0 = vcmp.gt.f32.partialorder %v728_v15, 0.0  ;;  %v461_v31 = vadd.f32 %v1640_v55, %v163_v41  ;;  %v465_v52 = vadd.f32 %v1646_v57, %v168_v36 }
 0x1f1   :  { %v729_v46 = vadd.f32 %v710_v19, %v447_v17  ;;  %v712_v22 = vpop.f32.mrb[23].mxu0  ;;  %1192 = vmatprep.subr.bf16.mxu0 %v1191_v45  ;;  %v775_v25 = vsel %vm743_vm15, %v727_v62, %v759_v20  ;;  %v173_v21 = vpop.permute.xlu1 %172  ;;  %p1279_p4 = pnand %p1278_p3, %p1272_p0 }
 0x1f2   :  { %v730_v23 = vadd.f32 %v712_v22, %v449_v18  ;;  %1194 = vmatpush1.bf16.msra.mxu0 %v1193_v14  ;;  %v776_v27 = vsel %vm744_vm0, %v728_v15, %v760_v38  ;;  %v178_v37 = vpop.permute.xlu0 %177  ;;  %v467_v18 = vadd.f32 %v1649_v58, %v168_v36  ;;  %v473_v58 = vadd.f32 %v1658_v61, %v173_v21 }
 0x1f3   :  { %vm745_vm1 = vcmp.gt.f32.partialorder %v729_v46, 0.0  ;;  %v761_v39 = vmul.f32 0.2, %v729_v46  ;;  %v477_v41 = vadd.f32 %v1664_v0, %v178_v37  ;;  %v479_v61 = vadd.f32 %v1667_v3, %v178_v37 }
 0x1f4   :  { %vm746_vm3 = vcmp.gt.f32.partialorder %v730_v23, 0.0  ;;  %v762_v24 = vmul.f32 0.2, %v730_v23 }
 0x1f5   :  { %v777_v26 = vsel %vm745_vm1, %v729_v46, %v761_v39  ;;  %v999_v42 = vpop.permute.xlu1 %998  ;;  %v471_v46 = vadd.f32 %v1655_v60, %v173_v21 }
 0x1f6   :  { %v1197_v48 = vpack.c.bf16 %v777_v26, %v775_v25  ;;  %v778_v28 = vsel %vm746_vm3, %v730_v23, %v762_v24  ;;  %v1004_v56 = vpop.permute.xlu0 %1003 }
 0x1f7   :  { %v1195_v49 = vpack.c.bf16 %v778_v28, %v776_v27 }
 0x1f9   :  { %1196 = vmatprep.subr.bf16.mxu0 %v1195_v49  ;;  %v183_v1 = vpop.permute.xlu1 %182 }
 0x1fa   :  { %1198 = vmatpush1.bf16.msra.mxu0 %v1197_v48  ;;  %v1009_v55 = vpop.permute.xlu0 %1008 }
 0x1fd   :  { %1159 = vmatmul.mubr.msk.f32.vlgmr.msra.gmra.mrb[24].mxu0 %vm577_vm2, %v779_v29 }
 0x1fe   :  { %881 = vmatprep.mubr.f32.mxu0 %v1295_v2  ;;  %v1014_v16 = vpop.permute.xlu0 %1013 }
 0x201   :  { %1160 = vmatmul.mubr.msk.f32.gmra.mrb[26].mxu0 %vm577_vm2, %v780_v30  ;;  %v188_v30 = vpop.permute.xlu1 %187 }
 0x202   :  { %887 = vmatprep.mubr.f32.mxu0 %v1295_v2 }
 0x205   :  { %1161 = vmatmul.mubr.msk.f32.gmra.mrb[28].mxu0 %vm577_vm2, %v781_v32 }
 0x206   :  { %893 = vmatprep.mubr.f32.mxu0 %v1295_v2 }
 0x209   :  { %1162 = vmatmul.mubr.msk.f32.gmra.mrb[30].mxu0 %vm577_vm2, %v782_v5 }
 0x20a   :  { %899 = vmatprep.mubr.f32.mxu0 %v1295_v2 }
 0x20d   :  { %1163 = vmatmul.mubr.msk.f32.gmra.mrb[32].mxu0 %vm577_vm2, %v783_v8 }
 0x20e   :  { %905 = vmatprep.mubr.f32.mxu0 %v1295_v2 }
 0x211   :  { %1164 = vmatmul.mubr.msk.f32.gmra.mrb[34].mxu0 %vm577_vm2, %v784_v40 }
 0x212   :  { %911 = vmatprep.mubr.f32.mxu0 %v1295_v2 }
 0x215   :  { %1165 = vmatmul.mubr.msk.f32.gmra.mrb[36].mxu0 %vm577_vm2, %v785_v33 }
 0x216   :  { %917 = vmatprep.mubr.f32.mxu0 %v1295_v2 }
 0x219   :  { %1166 = vmatmul.mubr.msk.f32.gmra.mrb[38].mxu0 %vm577_vm2, %v786_v34 }
 0x2d0   :  { %v877_v50 = vpop.f32.mrb[24].mxu0 }
 0x2d1   :  { %v924_v53 = vadd.f32 %v877_v50, %v453_v44  ;;  %v879_v43 = vpop.f32.mrb[25].mxu0 }
 0x2d2   :  { %v925_v2 = vadd.f32 %v879_v43, %v455_v47 }
 0x2d3   :  { %v956_v62 = vmul.f32 0.2, %v924_v53  ;;  %vm940_vm2 = vcmp.gt.f32.partialorder %v924_v53, 0.0 }
 0x2d4   :  { %v957_v4 = vmul.f32 0.2, %v925_v2  ;;  %v883_v14 = vpop.f32.mrb[26].mxu0  ;;  %vm941_vm4 = vcmp.gt.f32.partialorder %v925_v2, 0.0 }
 0x2d5   :  { %v926_v15 = vadd.f32 %v883_v14, %v459_v59  ;;  %v885_v35 = vpop.f32.mrb[27].mxu0  ;;  %v972_v17 = vsel %vm940_vm2, %v924_v53, %v956_v62 }
 0x2d6   :  { %v927_v51 = vadd.f32 %v885_v35, %v461_v31  ;;  %v973_v19 = vsel %vm941_vm4, %v925_v2, %v957_v4  ;;  %v1036_v39 = vmul.f32 %v999_v42, %v972_v17  ;;  %v193_v31 = vpop.permute.xlu1 %192  ;;  %v483_v4 = vadd.f32 %v1673_v6, %v183_v1 }
 0x2d7   :  { %vm942_vm5 = vcmp.gt.f32.partialorder %v926_v15, 0.0  ;;  %v958_v45 = vmul.f32 0.2, %v926_v15  ;;  %v1037_v57 = vmul.f32 %v999_v42, %v973_v19 }
 0x2d8   :  { %vm943_vm6 = vcmp.gt.f32.partialorder %v927_v51, 0.0  ;;  %v959_v54 = vmul.f32 0.2, %v927_v51  ;;  %v889_v20 = vpop.f32.mrb[28].mxu0 }
 0x2d9   :  { %v974_v22 = vsel %vm942_vm5, %v926_v15, %v958_v45  ;;  %v928_v38 = vadd.f32 %v889_v20, %v465_v52  ;;  %v891_v23 = vpop.f32.mrb[29].mxu0  ;;  %v485_v15 = vadd.f32 %v1676_v7, %v183_v1 }
 0x2da   :  { %v1038_v24 = vmul.f32 %v1004_v56, %v974_v22  ;;  %v975_v25 = vsel %vm943_vm6, %v927_v51, %v959_v54  ;;  %v929_v26 = vadd.f32 %v891_v23, %v467_v18  ;;  %v1019_v51 = vpop.permute.xlu0 %1018  ;;  %v491_v22 = vadd.f32 %v1681_v10, %v188_v30  ;;  %v1024_v23 = vpop.permute.xlu1 %1023 }
 0x2db   :  { %v1039_v48 = vmul.f32 %v1004_v56, %v975_v25  ;;  %vm944_vm7 = vcmp.gt.f32.partialorder %v928_v38, 0.0  ;;  %v960_v27 = vmul.f32 0.2, %v928_v38 }
 0x2dc   :  { %v1052_v28 = vadd.f32 %v1038_v24, %v1036_v39  ;;  %vm945_vm8 = vcmp.gt.f32.partialorder %v929_v26, 0.0  ;;  %v961_v49 = vmul.f32 0.2, %v929_v26  ;;  %v895_v29 = vpop.f32.mrb[30].mxu0 }
 0x2dd   :  { %v1065_v32 = vadd.f32 %v1039_v48, %v1037_v57  ;;  %v976_v60 = vsel %vm944_vm7, %v928_v38, %v960_v27  ;;  %v930_v5 = vadd.f32 %v895_v29, %v471_v46  ;;  %v897_v8 = vpop.f32.mrb[31].mxu0 }
 0x2de   :  { %v1040_v40 = vmul.f32 %v1009_v55, %v976_v60  ;;  %v977_v33 = vsel %vm945_vm8, %v929_v26, %v961_v49  ;;  %v931_v34 = vadd.f32 %v897_v8, %v473_v58  ;;  %v495_v58 = vadd.f32 %v1683_v63, %v193_v31 }
 0x2df   :  { %v1041_v36 = vmul.f32 %v1009_v55, %v977_v33  ;;  %vm946_vm9 = vcmp.gt.f32.partialorder %v930_v5, 0.0  ;;  %v962_v44 = vmul.f32 0.2, %v930_v5  ;;  %v489_v55 = vadd.f32 %v1679_v9, %v188_v30 }
 0x2e0   :  { %v1053_v21 = vadd.f32 %v1052_v28, %v1040_v40  ;;  %vm947_vm10 = vcmp.gt.f32.partialorder %v931_v34, 0.0  ;;  %v963_v47 = vmul.f32 0.2, %v931_v34  ;;  %v901_v50 = vpop.f32.mrb[32].mxu0  ;;  %v497_v49 = vadd.f32 %v1685_v11, %v193_v31 }
 0x2e1   :  { %v1066_v42 = vadd.f32 %v1065_v32, %v1041_v36  ;;  %v978_v53 = vsel %vm946_vm9, %v930_v5, %v962_v44  ;;  %v932_v43 = vadd.f32 %v901_v50, %v477_v41  ;;  %v903_v2 = vpop.f32.mrb[33].mxu0  ;;  %v1029_v32 = vpop.permute.xlu0 %1028 }
 0x2e2   :  { %v1042_v56 = vmul.f32 %v1014_v16, %v978_v53  ;;  %v979_v59 = vsel %vm947_vm10, %v931_v34, %v963_v47  ;;  %v933_v62 = vadd.f32 %v903_v2, %v479_v61  ;;  %v1034_v61 = vpop.permute.xlu1 %1033 }
 0x2e3   :  { %v1043_v0 = vmul.f32 %v1014_v16, %v979_v59  ;;  %vm948_vm11 = vcmp.gt.f32.partialorder %v932_v43, 0.0  ;;  %v964_v14 = vmul.f32 0.2, %v932_v43 }
 0x2e4   :  { %v1054_v3 = vadd.f32 %v1053_v21, %v1042_v56  ;;  %vm949_vm12 = vcmp.gt.f32.partialorder %v933_v62, 0.0  ;;  %v965_v37 = vmul.f32 0.2, %v933_v62  ;;  %v907_v35 = vpop.f32.mrb[34].mxu0 }
 0x2e5   :  { %v1067_v52 = vadd.f32 %v1066_v42, %v1043_v0  ;;  %v980_v17 = vsel %vm948_vm11, %v932_v43, %v964_v14  ;;  %v934_v45 = vadd.f32 %v907_v35, %v483_v4  ;;  %v909_v18 = vpop.f32.mrb[35].mxu0  ;;  %v1092_v35 = vlaneseq }
 0x2e6   :  { %v1044_v19 = vmul.f32 %v1019_v51, %v980_v17  ;;  %v981_v54 = vsel %vm949_vm12, %v933_v62, %v965_v37  ;;  %v935_v20 = vadd.f32 %v909_v18, %v485_v15 }
 0x2e7   :  { %v1045_v6 = vmul.f32 %v1019_v51, %v981_v54  ;;  %vm950_vm13 = vcmp.gt.f32.partialorder %v934_v45, 0.0  ;;  %v966_v46 = vmul.f32 0.2, %v934_v45  ;;  %v198_v51 = vpop.permute.xlu0 %197  ;;  %vm1106_vm5 = vcmp.lt.s32.totalorder %v1092_v35, 256 }
 0x2e8   :  { %v1055_v7 = vadd.f32 %v1054_v3, %v1044_v19  ;;  %vm951_vm14 = vcmp.gt.f32.partialorder %v935_v20, 0.0  ;;  %v967_v1 = vmul.f32 0.2, %v935_v20  ;;  %v913_v38 = vpop.f32.mrb[36].mxu0  ;;  %v1297_v3 = vmov 1966171168  }
 0x2e9   :  { %v1068_v39 = vadd.f32 %v1067_v52, %v1045_v6  ;;  %v982_v24 = vsel %vm950_vm13, %v934_v45, %v966_v46  ;;  %v936_v25 = vadd.f32 %v913_v38, %v489_v55  ;;  %v915_v26 = vpop.f32.mrb[37].mxu0  ;;  %v1090_v37 = vunpack.c.l.s4 %v1297_v3 }
 0x2ea   :  { %v1046_v57 = vmul.f32 %v1024_v23, %v982_v24  ;;  %v983_v48 = vsel %vm951_vm14, %v935_v20, %v967_v1  ;;  %v937_v27 = vadd.f32 %v915_v26, %v491_v22  ;;  %v501_v17 = vadd.f32 %v1687_v12, %v198_v51 }
 0x2eb   :  { %v1047_v9 = vmul.f32 %v1024_v23, %v983_v48  ;;  %vm952_vm15 = vcmp.gt.f32.partialorder %v936_v25, 0.0  ;;  %v968_v28 = vmul.f32 0.2, %v936_v25  ;;  %v503_v18 = vadd.f32 %v1689_v13, %v198_v51 }
 0x2ec   :  { %v1056_v10 = vadd.f32 %v1055_v7, %v1046_v57  ;;  %vm953_vm0 = vcmp.gt.f32.partialorder %v937_v27, 0.0  ;;  %v969_v29 = vmul.f32 0.2, %v937_v27  ;;  %v919_v30 = vpop.f32.mrb[38].mxu0  ;;  %v1091_v20 = vunpack.c.0.s8 %v1090_v37 }
 0x2ed   :  { %v1069_v60 = vadd.f32 %v1068_v39, %v1047_v9  ;;  %v984_v5 = vsel %vm952_vm15, %v936_v25, %v968_v28  ;;  %v938_v8 = vadd.f32 %v919_v30, %v495_v58  ;;  %v921_v40 = vpop.f32.mrb[39].mxu0  ;;  %v1093_v55 = vshrl.u32 %v1092_v35, 7 }
 0x2ee   :  { %v1048_v33 = vmul.f32 %v1029_v32, %v984_v5  ;;  %v985_v34 = vsel %vm953_vm0, %v937_v27, %v969_v29  ;;  %v939_v16 = vadd.f32 %v921_v40, %v497_v49 }
 0x2ef   :  { %v1049_v41 = vmul.f32 %v1029_v32, %v985_v34  ;;  %vm954_vm1 = vcmp.gt.f32.partialorder %v938_v8, 0.0  ;;  %v970_v63 = vmul.f32 0.2, %v938_v8  ;;  %v1094_v1 = vsub.s32 %v1091_v20, %v1093_v55 }
 0x2f0   :  { %v1057_v36 = vadd.f32 %v1056_v10, %v1048_v33  ;;  %vm955_vm3 = vcmp.gt.f32.partialorder %v939_v16, 0.0  ;;  %v971_v44 = vmul.f32 0.2, %v939_v16 }
 0x2f1   :  { %v1070_v11 = vadd.f32 %v1069_v60, %v1049_v41  ;;  %v986_v21 = vsel %vm954_vm1, %v938_v8, %v970_v63 }
 0x2f2   :  { %v1050_v47 = vmul.f32 %v1034_v61, %v986_v21  ;;  %v987_v50 = vsel %vm955_vm3, %v939_v16, %v971_v44 }
 0x2f3   :  { %v1051_v42 = vmul.f32 %v1034_v61, %v987_v50 }
 0x2f4   :  { %v1058_v53 = vadd.f32 %v1057_v36, %v1050_v47 }
 0x2f5   :  { %v1071_v43 = vadd.f32 %v1070_v11, %v1051_v42 }
 0x2f6   :  { %v1059_v2 = vrot.slane %v1058_v53, 4 }
 0x2f7   :  { %v1072_v56 = vrot.slane %v1071_v43, 4 }
 0x2f8   :  { %v1060_v59 = vadd.f32 %v1059_v2, %v1058_v53 }
 0x2f9   :  { %v1073_v62 = vadd.f32 %v1072_v56, %v1071_v43 }
 0x2fa   :  { %v1061_v31 = vrot.slane %v1060_v59, 2 }
 0x2fb   :  { %v1074_v4 = vrot.slane %v1073_v62, 2 }
 0x2fc   :  { %v1062_v0 = vadd.f32 %v1061_v31, %v1060_v59 }
 0x2fd   :  { %v1075_v14 = vadd.f32 %v1074_v4, %v1073_v62 }
 0x2fe   :  { %v1063_v15 = vrot.slane %v1062_v0, 1 }
 0x2ff   :  { %v1076_v52 = vrot.slane %v1075_v14, 1 }
 0x300   :  { %v1064_v45 = vadd.f32 %v1063_v15, %v1062_v0 }
 0x301   :  { %v1077_v19 = vadd.f32 %v1076_v52, %v1075_v14 }
 0x302   :  { %v1078_v54 = vadd.f32 %v1064_v45, %v501_v17 }
 0x303   :  { %v1079_v6 = vadd.f32 %v1077_v19, %v503_v18 }
 0x304   :  { %vm1080_vm2 = vcmp.gt.f32.partialorder %v1078_v54, 0.0  ;;  %v1082_v46 = vmul.f32 0.2, %v1078_v54 }
 0x305   :  { %vm1081_vm4 = vcmp.gt.f32.partialorder %v1079_v6, 0.0  ;;  %v1083_v22 = vmul.f32 0.2, %v1079_v6 }
 0x306   :  { %v1084_v7 = vsel %vm1080_vm2, %v1078_v54, %v1082_v46 }
 0x307   :  { %v1085_v38 = vsel %vm1081_vm4, %v1079_v6, %v1083_v22 }
 0x308   :  { %v1088_v23 = vcombine.low %v1084_v7, %v1085_v38 }
 0x30a   :  { %v1095_v39 = vrot.slane %v1088_v23, %v1094_v1 }
 0x30c   :  { %v1102_v12 = vrot.slane %v1095_v39, %v1094_v1 }
 0x30e   :  { %1108 = vst.msk [vmem:[#allocation2] sm:$0x3] %vm1106_vm5, %v1102_v12 }
 0x30f   :  { %1282 = shalt.err (!%p1279_p4)
}
 0x310   :  { %s1283_s18 = scalar_lea.hbm %s1782_s6, 32 }
 0x311   :  { %p1284_p5 = scmp.ne.s32.totalorder %s1782_s6, %s1283_s18  ;;  %p1287_p6 = scmp.lt.u32.totalorder %s1283_s18, %s1782_s6 }
 0x313   :  { %p1289_p7 = pnand %p1287_p6, %p1284_p5 }
 0x315   :  { %1292 = shalt.err (!%p1289_p7)
}
 0x316   :  { %1118 = dma.vmem_to_hbm [thread:$0]  %s1116_s14, 32, %s1782_s6, [#allocation3]  }
 0x317   :  { %1293 = dma.done.wait [#allocation3], 32  }
 0x318   :  { %1294 = vsyncadd [#allocation3], 4294967264 }
 0x319   :  { %1122 = vsyncpa [#allocation3], 1 }

</bundles_post_ra>
